<compile_context>
chip_gen: v6e
topology: v6e:2x2x1
jax: 0.10.0
libtpu: 0.0.40
codegen_flags: <defaults>
</compile_context>

<pallas_src>
import functools

import jax
import jax.numpy as jnp
from jax import lax
from jax.experimental import pallas as pl
from jax.experimental.pallas import tpu as pltpu


_COLS = 512            # lane-dense width, multiple of 128
_MAX_TILE_ROWS = 512   # (512, 512) f32 block = 1 MiB per buffer


def _round_up(x, m):
    return ((x + m - 1) // m) * m


def _tile_noise(shape, tile_idx, *, keep_prob, seed, dtype):
    """Deterministic scaled-Bernoulli noise for one (tile_rows, cols) tile.

    Counter-based PRNG: murmur3-style fmix32 of the global element index mixed
    with `seed`.  Same (seed, layout) -> bitwise-identical noise on every call,
    which is exactly what 'static' dropout needs, without any HBM mask read.
    """
    if keep_prob <= 0.0:          # p == 1: noise is all zeros (matches fill_(0))
        return jnp.zeros(shape, dtype=dtype)
    if keep_prob >= 1.0:          # p == 0: noise is all ones
        return jnp.ones(shape, dtype=dtype)

    tile_rows, cols = shape
    row = lax.broadcasted_iota(jnp.int32, shape, 0)
    col = lax.broadcasted_iota(jnp.int32, shape, 1)
    # Global flat element index (int32; fine for < 2^31 elements).
    gidx = (tile_idx * tile_rows + row) * cols + col

    h = gidx.astype(jnp.uint32) * jnp.uint32(0x9E3779B9)
    h = h + jnp.uint32(seed & 0xFFFFFFFF)
    h = h ^ (h >> 16)
    h = h * jnp.uint32(0x85EBCA6B)
    h = h ^ (h >> 13)
    h = h * jnp.uint32(0xC2B2AE35)
    h = h ^ (h >> 16)

    # Integer compare against keep_prob * 2^32 (keep_prob < 1 here, no overflow).
    thresh = jnp.uint32(min(int(keep_prob * 4294967296.0), 0xFFFFFFFF))
    keep = h < thresh

    scale = jnp.float32(1.0 / keep_prob)
    noise_f32 = jnp.where(keep, scale, jnp.float32(0.0))
    return noise_f32.astype(dtype)


def _gen_and_apply_kernel(x_ref, noise_ref, y_ref, *, keep_prob, seed):
    """First training call: materialize noise AND apply it."""
    noise = _tile_noise(x_ref.shape, pl.program_id(0),
                        keep_prob=keep_prob, seed=seed, dtype=x_ref.dtype)
    noise_ref[...] = noise
    y_ref[...] = x_ref[...] * noise


def _apply_kernel(x_ref, y_ref, *, keep_prob, seed):
    """Steady state: regenerate the (identical) noise on-chip and apply it."""
    noise = _tile_noise(x_ref.shape, pl.program_id(0),
                        keep_prob=keep_prob, seed=seed, dtype=x_ref.dtype)
    y_ref[...] = x_ref[...] * noise


def _block_spec(tile_rows, cols):
    return pl.BlockSpec((tile_rows, cols), lambda i: (i, 0))


def _gen_and_apply(x2d, *, keep_prob, seed, tile_rows):
    rows, cols = x2d.shape
    kernel = functools.partial(_gen_and_apply_kernel,
                               keep_prob=keep_prob, seed=seed)
    noise, y = pl.pallas_call(
        kernel,
        out_shape=(jax.ShapeDtypeStruct((rows, cols), x2d.dtype),
                   jax.ShapeDtypeStruct((rows, cols), x2d.dtype)),
        grid=(rows // tile_rows,),
        in_specs=[_block_spec(tile_rows, cols)],
        out_specs=(_block_spec(tile_rows, cols), _block_spec(tile_rows, cols)),
        compiler_params=pltpu.CompilerParams(
            dimension_semantics=("parallel",)),
    )(x2d)
    return noise, y


def _apply(x2d, *, keep_prob, seed, tile_rows):
    rows, cols = x2d.shape
    kernel = functools.partial(_apply_kernel, keep_prob=keep_prob, seed=seed)
    return pl.pallas_call(
        kernel,
        out_shape=jax.ShapeDtypeStruct((rows, cols), x2d.dtype),
        grid=(rows // tile_rows,),
        in_specs=[_block_spec(tile_rows, cols)],
        out_specs=_block_spec(tile_rows, cols),
        compiler_params=pltpu.CompilerParams(
            dimension_semantics=("parallel",)),
    )(x2d)


class StaticDropout:
    """JAX/Pallas port of nmtg StaticDropout."""

    def __init__(self, p=0.5, seed=0):
        if not 0 <= p <= 1:
            raise ValueError(
                "Dropout probability has to be between 0 and 1, but got "
                "{:f}".format(p))
        self.p = p
        self.noise = None            # cached noise in the input's shape
        self.training = True
        self._base_seed = int(seed)
        self._generation = 0         # bumped by reset_state -> fresh noise
        self._active_seed = None
        self._layout = None          # (rows_padded, cols, tile_rows)

    # ---- layout helpers -------------------------------------------------
    def _plan(self, n):
        cols = _COLS
        rows = -(-n // cols)
        tile_rows = min(_MAX_TILE_ROWS, _round_up(max(rows, 1), 8))
        rows_p = _round_up(max(rows, 1), tile_rows)
        return rows_p, cols, tile_rows

    @staticmethod
    def _to_2d(x, rows_p, cols):
        flat = x.reshape(-1)
        pad = rows_p * cols - flat.shape[0]
        if pad:
            flat = jnp.pad(flat, (0, pad))
        return flat.reshape(rows_p, cols)

    # ---- forward --------------------------------------------------------
    def __call__(self, inputs):
        if not self.training:
            return inputs

        n = inputs.size
        keep_prob = 1.0 - self.p

        if self.noise is None:
            rows_p, cols, tile_rows = self._plan(n)
            self._layout = (rows_p, cols, tile_rows)
            self._active_seed = (self._base_seed
                                 + 0x7F4A7C15 * self._generation) & 0xFFFFFFFF
            x2d = self._to_2d(inputs, rows_p, cols)
            noise2d, y2d = _gen_and_apply(
                x2d, keep_prob=keep_prob, seed=self._active_seed,
                tile_rows=tile_rows)
            # Keep the materialized noise around (reference keeps self.noise).
            self.noise = noise2d.reshape(-1)[:n].reshape(inputs.shape)
        else:
            # TODO(synk): like the reference, assumes later inputs share the
            # shape seen when the noise was generated.
            rows_p, cols, tile_rows = self._layout
            x2d = self._to_2d(inputs, rows_p, cols)
            y2d = _apply(x2d, keep_prob=keep_prob, seed=self._active_seed,
                         tile_rows=tile_rows)

        return y2d.reshape(-1)[:n].reshape(inputs.shape)

    def reset_state(self):
        self.noise = None
        self._generation += 1

    def extra_repr(self):
        return "p={:f}".format(self.p)


if __name__ == "__main__":
    key = jax.random.PRNGKey(0)
    x = jax.random.normal(key, (2, 4, 16, 16), dtype=jnp.float32)  # NCHW

    module = StaticDropout(p=0.5, seed=0)

    # First training forward: generates static noise and applies it.
    y1 = module(x)
    jax.block_until_ready(y1)

    # Second training forward: reuses the SAME noise (static dropout).
    y2 = module(x)
    jax.block_until_ready(y2)

    # Sanity checks on semantics.
    assert y1.shape == x.shape and y1.dtype == x.dtype
    assert jnp.allclose(y1, y2)                      # noise is static across calls
    noise4d = module.noise
    scaled = noise4d * (1.0 - module.p)              # values are 0 or 1/(1-p)
    assert bool(jnp.all((scaled == 0.0) | (scaled == 1.0)))
    assert jnp.allclose(y1, x * noise4d)
    # Mask is neither all-zero nor all-one for p=0.5.
    assert 0.0 < float(jnp.mean(scaled)) < 1.0

    # Eval mode: identity.
    module.training = False
    y_eval = module(x)
    jax.block_until_ready(y_eval)
    assert jnp.allclose(y_eval, x)

    print("KERNEL_OK")
</pallas_src>

<mosaic_0001>
module attributes {stable_mosaic.version = 11 : i64} {
  func.func @_gen_and_apply_kernel(%arg0: i32, %arg1: memref<8x512xf32, #tpu.memory_space<vmem>>, %arg2: memref<8x512xf32, #tpu.memory_space<vmem>>, %arg3: memref<8x512xf32, #tpu.memory_space<vmem>>) attributes {dimension_semantics = [#tpu.dimension_semantics<parallel>], iteration_bounds = array<i64: 1>, scalar_prefetch = 0 : i64, scratch_operands = 0 : i64, tpu.core_type = #tpu.core_type<tc>, window_params = [{transform_indices = @transform_0, window_bounds = array<i64: 8, 512>}, {transform_indices = @transform_1, window_bounds = array<i64: 8, 512>}, {transform_indices = @transform_2, window_bounds = array<i64: 8, 512>}]} {
    %0 = tpu.iota {dimensions = array<i32: 0>} : vector<8x512xi32>
    %1 = tpu.iota {dimensions = array<i32: 1>} : vector<8x512xi32>
    %c8_i32 = arith.constant 8 : i32
    %2 = arith.muli %arg0, %c8_i32 : i32
    %3 = vector.broadcast %2 : i32 to vector<8x512xi32>
    %4 = arith.addi %3, %0 : vector<8x512xi32>
    %c512_i32 = arith.constant 512 : i32
    %5 = vector.broadcast %c512_i32 : i32 to vector<8x512xi32>
    %6 = arith.muli %4, %5 : vector<8x512xi32>
    %7 = arith.addi %6, %1 : vector<8x512xi32>
    %c-1640531527_i32 = arith.constant -1640531527 : i32
    %8 = vector.broadcast %c-1640531527_i32 : i32 to vector<8x512xi32>
    %9 = arith.muli %7, %8 : vector<8x512xi32>
    %c0_i32 = arith.constant 0 : i32
    %10 = vector.broadcast %c0_i32 : i32 to vector<8x512xi32>
    %11 = arith.addi %9, %10 : vector<8x512xi32>
    %c16_i32 = arith.constant 16 : i32
    %12 = vector.broadcast %c16_i32 : i32 to vector<8x512xi32>
    %13 = arith.shrui %11, %12 : vector<8x512xi32>
    %14 = arith.xori %11, %13 : vector<8x512xi32>
    %c-2048144789_i32 = arith.constant -2048144789 : i32
    %15 = vector.broadcast %c-2048144789_i32 : i32 to vector<8x512xi32>
    %16 = arith.muli %14, %15 : vector<8x512xi32>
    %c13_i32 = arith.constant 13 : i32
    %17 = vector.broadcast %c13_i32 : i32 to vector<8x512xi32>
    %18 = arith.shrui %16, %17 : vector<8x512xi32>
    %19 = arith.xori %16, %18 : vector<8x512xi32>
    %c-1028477387_i32 = arith.constant -1028477387 : i32
    %20 = vector.broadcast %c-1028477387_i32 : i32 to vector<8x512xi32>
    %21 = arith.muli %19, %20 : vector<8x512xi32>
    %c16_i32_0 = arith.constant 16 : i32
    %22 = vector.broadcast %c16_i32_0 : i32 to vector<8x512xi32>
    %23 = arith.shrui %21, %22 : vector<8x512xi32>
    %24 = arith.xori %21, %23 : vector<8x512xi32>
    %c-2147483648_i32 = arith.constant -2147483648 : i32
    %25 = vector.broadcast %c-2147483648_i32 : i32 to vector<8x512xi32>
    %26 = arith.cmpi ult, %24, %25 : vector<8x512xi32>
    %cst = arith.constant 2.000000e+00 : f32
    %cst_1 = arith.constant 0.000000e+00 : f32
    %27 = vector.broadcast %cst : f32 to vector<8x512xf32>
    %28 = vector.broadcast %cst_1 : f32 to vector<8x512xf32>
    %29 = arith.select %26, %27, %28 : vector<8x512xi1>, vector<8x512xf32>
    %c0 = arith.constant 0 : index
    %c0_2 = arith.constant 0 : index
    %30 = vector.load %arg2[%c0, %c0_2] : memref<8x512xf32, #tpu.memory_space<vmem>>, vector<8x512xf32>
    tpu.vector_store %arg2[%c0, %c0_2], %29 {strides = array<i32>} : memref<8x512xf32, #tpu.memory_space<vmem>>, vector<8x512xf32>,
    %c0_3 = arith.constant 0 : index
    %c0_4 = arith.constant 0 : index
    %31 = vector.load %arg1[%c0_3, %c0_4] : memref<8x512xf32, #tpu.memory_space<vmem>>, vector<8x512xf32>
    %32 = arith.mulf %31, %29 : vector<8x512xf32>
    %c0_5 = arith.constant 0 : index
    %c0_6 = arith.constant 0 : index
    %33 = vector.load %arg3[%c0_5, %c0_6] : memref<8x512xf32, #tpu.memory_space<vmem>>, vector<8x512xf32>
    tpu.vector_store %arg3[%c0_5, %c0_6], %32 {strides = array<i32>} : memref<8x512xf32, #tpu.memory_space<vmem>>, vector<8x512xf32>,
    return
  }
  func.func @transform_0(%arg0: i32) -> (i32, i32) {
    %c0_i32 = arith.constant 0 : i32
    %c0_i32_0 = arith.constant 0 : i32
    return %arg0, %c0_i32 : i32, i32
  }
  func.func @transform_1(%arg0: i32) -> (i32, i32) {
    %c0_i32 = arith.constant 0 : i32
    %c0_i32_0 = arith.constant 0 : i32
    return %arg0, %c0_i32 : i32, i32
  }
  func.func @transform_2(%arg0: i32) -> (i32, i32) {
    %c0_i32 = arith.constant 0 : i32
    %c0_i32_0 = arith.constant 0 : i32
    return %arg0, %c0_i32 : i32, i32
  }
}

</mosaic_0001>

<bundles_post_ra>
// kernel: tpu_custom_call.1
= control target key start
LH: loop header
LB: loop body
LE: loop exit
PB: predicated region body
PF: predicated region fallthrough
CT: control target
= control target key end

     0   :  { %8 = vsyncpa [#allocation3], 0  ;;  %s226_s0 = inlined_call_operand.hbm [shape: f32[8,512], index: 0, kind: input, shape index: {}]   ;;  %s227_s1 = inlined_call_operand.hbm [shape: f32[8,512], index: 1, kind: output, shape index: {0}]   ;;  %s228_s2 = inlined_call_operand.hbm [shape: f32[8,512], index: 2, kind: output, shape index: {1}]  }
   0x1   :  { %9 = vsyncpa [#allocation4], 0 }
   0x2   :  { %10 = vsyncpa [#allocation7], 0  ;;  %s198_s9 = smov [#allocation2]  }
   0x3   :  { %s17_s10 = sshll.u32 %s198_s9, 4  ;;  %s18_s10 = int_to_ptr.vmem [resolvable:$true] %s17_s10 }
   0x4   :  { %s140_s11 = scalar_lea.vmem %s18_s10, 512  ;;  %p145_p1 = scmp.lt.s32.totalorder %s18_s10, %s18_s10 }
   0x5   :  { %p141_p0 = scmp.ne.s32.totalorder %s18_s10, %s140_s11  ;;  %p146_p2 = scmp.lt.s32.totalorder %s140_s11, %s140_s11 }
   0x7   :  { %p147_p3 = por %p146_p2, %p145_p1 }
   0x9   :  { %p148_p4 = pnand %p147_p3, %p141_p0 }
   0xb   :  { %151 = shalt.err (!%p148_p4)
}
   0xc   :  { %20 = dma.hbm_to_vmem [thread:$0]  %s226_s0, 512, %s18_s10, [#allocation3]  }
   0xd   :  { %192 = dma.done.wait [#allocation3], 512  }
   0xe   :  { %193 = vsyncadd [#allocation3], 4294966784  ;;  %v24_v0 = vlaneseq  ;;  %s199_s0 = smov [#allocation5]   ;;  %v87_v47 = vld [vmem:[#allocation2] sm:$0xff]  ;;  %v88_v48 = vld [vmem:[#allocation2 + $0x8] sm:$0xff]  ;;  %s200_s15 = smov [#allocation6]  }
   0xf   :  { %s105_s14 = sshll.u32 %s199_s0, 4  ;;  %v89_v49 = vld [vmem:[#allocation2 + $0x10] sm:$0xff]  ;;  %v90_v50 = vld [vmem:[#allocation2 + $0x18] sm:$0xff]  ;;  %s115_s16 = sshll.u32 %s200_s15, 4  ;;  %v201_v51 = vmov 0.0   ;;  %s106_s14 = int_to_ptr.vmem [resolvable:$true] %s105_s14  ;;  %s116_s16 = int_to_ptr.vmem [resolvable:$true] %s115_s16 }
  0x10   :  { %v25_v1 = vshrl.u32 %v24_v0, 7  ;;  %v27_v2 = vand.u32 127, %v24_v0  ;;  %s152_s17 = scalar_lea.vmem %s106_s14, 512  ;;  %p157_p6 = scmp.lt.s32.totalorder %s106_s14, %s106_s14 }
  0x11   :  { %p153_p5 = scmp.ne.s32.totalorder %s106_s14, %s152_s17  ;;  %p158_p7 = scmp.lt.s32.totalorder %s152_s17, %s152_s17 }
  0x12   :  { %v34_v3 = vmul.u32 512, %v25_v1  ;;  %v28_v4 = vadd.s32 128, %v27_v2  ;;  %v29_v5 = vadd.s32 256, %v27_v2  ;;  %v30_v6 = vadd.s32 384, %v27_v2 }
  0x13   :  { %p159_p8 = por %p158_p7, %p157_p6 }
  0x14   :  { %v35_v7 = vadd.s32 %v34_v3, %v27_v2  ;;  %v36_v8 = vadd.s32 %v34_v3, %v28_v4  ;;  %v37_v9 = vadd.s32 %v34_v3, %v29_v5  ;;  %v38_v10 = vadd.s32 %v34_v3, %v30_v6 }
  0x15   :  { %p160_p9 = pnand %p159_p8, %p153_p5 }
  0x16   :  { %v39_v11 = vmul.u32 2654435769, %v35_v7  ;;  %v40_v12 = vmul.u32 2654435769, %v36_v8 }
  0x17   :  { %v41_v13 = vmul.u32 2654435769, %v37_v9  ;;  %v42_v14 = vmul.u32 2654435769, %v38_v10 }
  0x18   :  { %v43_v15 = vshrl.u32 %v39_v11, 16  ;;  %v44_v16 = vshrl.u32 %v40_v12, 16 }
  0x19   :  { %v45_v17 = vshrl.u32 %v41_v13, 16  ;;  %v46_v18 = vshrl.u32 %v42_v14, 16 }
  0x1a   :  { %v47_v19 = vxor.u32 %v43_v15, %v39_v11  ;;  %v48_v20 = vxor.u32 %v44_v16, %v40_v12 }
  0x1b   :  { %v49_v21 = vxor.u32 %v45_v17, %v41_v13  ;;  %v50_v22 = vxor.u32 %v46_v18, %v42_v14 }
  0x1c   :  { %v51_v23 = vmul.u32 2246822507, %v47_v19  ;;  %v52_v24 = vmul.u32 2246822507, %v48_v20 }
  0x1d   :  { %v53_v25 = vmul.u32 2246822507, %v49_v21  ;;  %v54_v26 = vmul.u32 2246822507, %v50_v22 }
  0x1e   :  { %v55_v27 = vshrl.u32 %v51_v23, 13  ;;  %v56_v28 = vshrl.u32 %v52_v24, 13 }
  0x1f   :  { %v57_v29 = vshrl.u32 %v53_v25, 13  ;;  %v58_v30 = vshrl.u32 %v54_v26, 13 }
  0x20   :  { %v59_v31 = vxor.u32 %v55_v27, %v51_v23  ;;  %v60_v32 = vxor.u32 %v56_v28, %v52_v24 }
  0x21   :  { %v61_v33 = vxor.u32 %v57_v29, %v53_v25  ;;  %v62_v34 = vxor.u32 %v58_v30, %v54_v26 }
  0x22   :  { %v63_v35 = vmul.u32 3266489909, %v59_v31  ;;  %v64_v36 = vmul.u32 3266489909, %v60_v32 }
  0x23   :  { %v65_v37 = vmul.u32 3266489909, %v61_v33  ;;  %v66_v38 = vmul.u32 3266489909, %v62_v34 }
  0x24   :  { %v67_v39 = vshrl.u32 %v63_v35, 16  ;;  %v68_v40 = vshrl.u32 %v64_v36, 16 }
  0x25   :  { %v69_v41 = vshrl.u32 %v65_v37, 16  ;;  %v70_v42 = vshrl.u32 %v66_v38, 16 }
  0x26   :  { %v71_v43 = vxor.u32 %v67_v39, %v63_v35  ;;  %v72_v44 = vxor.u32 %v68_v40, %v64_v36 }
  0x27   :  { %v73_v45 = vxor.u32 %v69_v41, %v65_v37  ;;  %v74_v46 = vxor.u32 %v70_v42, %v66_v38 }
  0x28   :  { %vm75_vm0 = vcmp.lt.u32.totalorder %v71_v43, 2147483648  ;;  %vm76_vm1 = vcmp.lt.u32.totalorder %v72_v44, 2147483648 }
  0x29   :  { %v79_v52 = vsel %vm75_vm0, 2.0, %v201_v51  ;;  %v80_v53 = vsel %vm76_vm1, 2.0, %v201_v51  ;;  %vm77_vm2 = vcmp.lt.u32.totalorder %v73_v45, 2147483648  ;;  %vm78_vm3 = vcmp.lt.u32.totalorder %v74_v46, 2147483648 }
  0x2a   :  { %83 = vst [vmem:[#allocation5] sm:$0xff] %v79_v52  ;;  %84 = vst [vmem:[#allocation5 + $0x8] sm:$0xff] %v80_v53  ;;  %v81_v54 = vsel %vm77_vm2, 2.0, %v201_v51  ;;  %v82_v55 = vsel %vm78_vm3, 2.0, %v201_v51  ;;  %v91_v56 = vmul.f32 %v87_v47, %v79_v52  ;;  %v92_v57 = vmul.f32 %v88_v48, %v80_v53 }
  0x2b   :  { %85 = vst [vmem:[#allocation5 + $0x10] sm:$0xff] %v81_v54  ;;  %86 = vst [vmem:[#allocation5 + $0x18] sm:$0xff] %v82_v55  ;;  %v93_v58 = vmul.f32 %v89_v49, %v81_v54  ;;  %v94_v59 = vmul.f32 %v90_v50, %v82_v55 }
  0x2c   :  { %95 = vst [vmem:[#allocation6] sm:$0xff] %v91_v56  ;;  %96 = vst [vmem:[#allocation6 + $0x8] sm:$0xff] %v92_v57 }
  0x2d   :  { %163 = shalt.err (!%p160_p9)
}
  0x2e   :  { %108 = dma.vmem_to_hbm [thread:$0]  %s106_s14, 512, %s227_s1, [#allocation4]   ;;  %97 = vst [vmem:[#allocation6 + $0x10] sm:$0xff] %v93_v58  ;;  %98 = vst [vmem:[#allocation6 + $0x18] sm:$0xff] %v94_v59 }
  0x2f   :  { %s172_s20 = scalar_lea.vmem %s116_s16, 512  ;;  %p177_p11 = scmp.lt.s32.totalorder %s116_s16, %s116_s16 }
  0x30   :  { %p173_p10 = scmp.ne.s32.totalorder %s116_s16, %s172_s20  ;;  %p178_p12 = scmp.lt.s32.totalorder %s172_s20, %s172_s20 }
  0x32   :  { %p179_p13 = por %p178_p12, %p177_p11 }
  0x34   :  { %p180_p0 = pnand %p179_p13, %p173_p10 }
  0x36   :  { %183 = shalt.err (!%p180_p0)
}
  0x37   :  { %118 = dma.vmem_to_hbm [thread:$0]  %s116_s16, 512, %s228_s2, [#allocation7]  }
  0x38   :  { %194 = dma.done.wait [#allocation4], 512  }
  0x39   :  { %195 = vsyncadd [#allocation4], 4294966784 }
  0x3a   :  { %196 = dma.done.wait [#allocation7], 512  }
  0x3b   :  { %197 = vsyncadd [#allocation7], 4294966784 }
  0x3c   :  { %125 = vsyncpa [#allocation3], 1 }
  0x3d   :  { %126 = vsyncpa [#allocation4], 1 }
  0x3e   :  { %127 = vsyncpa [#allocation7], 1 }

</bundles_post_ra>
